<compile_context>
chip_gen: v6e
topology: v6e:2x2x1
jax: 0.10.0
libtpu: 0.0.40
codegen_flags: <defaults>
</compile_context>

<pallas_src>
import functools

import jax
import jax.numpy as jnp
from jax import lax
from jax.experimental import pallas as pl
from jax.experimental.pallas import tpu as pltpu

EPS = 1e-5  # nn.BatchNorm2d default eps


def _conv_bn_silu_kernel(x_ref, w_ref, gb_ref, mask_ref, o_ref, sum_ref, ssq_ref,
                         *, wp, m_ext, count):
    """Grid = (phase, tile).  phase 0: conv + one-pass BN stats.
    phase 1: conv + folded BN affine + SiLU + store."""
    phase = pl.program_id(0)
    t = pl.program_id(1)

    # ---- 3x3 conv: build the transposed im2col matrix in VMEM from 9 shifted
    # lane-windows of the flat, channel-major, padded slab, then one MXU matmul:
    #   (Cout, 9*Cin) @ (9*Cin, TH*(W+2))  ->  (Cout, TH*(W+2)) f32 ----
    slab = x_ref[0]                                         # (Cin, slab_cols), bf16
    pieces = [slab[:, dy * wp + dx: dy * wp + dx + m_ext]
              for dy in range(3) for dx in range(3)]
    patches = jnp.concatenate(pieces, axis=0)               # (9*Cin, m_ext), bf16
    acc = jnp.dot(w_ref[...], patches,
                  preferred_element_type=jnp.float32)       # (Cout, m_ext), f32

    # ---------------- phase 0: one-pass batch statistics ----------------
    @pl.when((phase == 0) & (t == 0))
    def _init():
        sum_ref[...] = jnp.zeros_like(sum_ref)
        ssq_ref[...] = jnp.zeros_like(ssq_ref)

    @pl.when(phase == 0)
    def _accumulate():
        m = acc * mask_ref[...]                 # zero the 2 discarded pad columns per row
        sum_ref[...] += jnp.sum(m, axis=1, keepdims=True)
        ssq_ref[...] += jnp.sum(m * m, axis=1, keepdims=True)

    # ---- phase 1: fold BN affine into one FMA, apply SiLU, dense store ----
    @pl.when((phase == 1) & (t == 0))
    def _finalize():
        inv_n = 1.0 / count
        mean = sum_ref[...] * inv_n
        var = ssq_ref[...] * inv_n - mean * mean            # biased batch variance
        scale = gb_ref[:, 0:1] * lax.rsqrt(var + EPS)
        shift = gb_ref[:, 1:2] - mean * scale
        sum_ref[...] = scale                                # scratch now holds scale/shift
        ssq_ref[...] = shift

    @pl.when(phase == 1)
    def _apply():
        y = acc * sum_ref[...] + ssq_ref[...]               # single FMA epilogue
        # SiLU: x * sigmoid(x); reciprocal goes to the EUP slot.
        o_ref[0] = y * pl.reciprocal(1.0 + jnp.exp(-y), approx=True)


def _pick_tile_rows(h, wp, max_cols=2048):
    """Largest divisor of H whose per-tile conv width TH*(W+2) fits the budget."""
    best = 1
    for cand in range(1, h + 1):
        if h % cand == 0 and cand * wp <= max_cols:
            best = cand
    return best


def conv_silu(x_nchw, weight, bias, gamma, beta):
    """x_nchw: (N, Cin, H, W); weight: (Cout, Cin, 3, 3) (PyTorch OIHW)."""
    # Train-mode BatchNorm subtracts the batch mean, so the conv bias cancels
    # exactly; skip the M x Cout add entirely (validated vs. the reference).
    del bias
    n, cin, h, w = x_nchw.shape
    cout, cin_w, kh, kw = weight.shape
    assert (kh, kw) == (3, 3) and cin_w == cin

    wp = w + 2
    tile_h = _pick_tile_rows(h, wp)
    nrt = h // tile_h                              # row-tiles per image
    num_tiles = n * nrt
    m_ext = tile_h * wp                            # conv rows per tile (incl. 2 pad cols/row)
    slab_cols = (tile_h + 2) * wp + 8              # +8 (>=2) covers the largest shifted read

    # ---- layout plumbing: channel-major slabs with a 2-row halo (no im2col) ----
    xp = jnp.pad(x_nchw, ((0, 0), (0, 0), (1, 1), (1, 1)))       # (N, Cin, H+2, W+2)
    row_idx = (jnp.arange(nrt) * tile_h)[:, None] + jnp.arange(tile_h + 2)[None, :]
    slabs = xp[:, :, row_idx]                                    # (N, Cin, nrt, TH+2, W+2)
    slabs = jnp.moveaxis(slabs, 2, 1)                            # (N, nrt, Cin, TH+2, W+2)
    slabs = slabs.reshape(num_tiles, cin, (tile_h + 2) * wp)
    slabs = jnp.pad(slabs, ((0, 0), (0, 0), (0, slab_cols - (tile_h + 2) * wp)))
    slabs = slabs.astype(jnp.bfloat16)                           # bf16 MXU operand

    # weights: OIHW -> (Cout, ky, kx, Cin) -> (Cout, 9*Cin), bf16 (matches patch order)
    w_t = jnp.transpose(weight, (0, 2, 3, 1)).reshape(cout, kh * kw * cin)
    w_t = w_t.astype(jnp.bfloat16)

    gb = jnp.stack([gamma, beta], axis=1).astype(jnp.float32)    # (Cout, 2)

    # mask of valid output columns (the 2 right-pad columns per row are discarded)
    col = jnp.arange(m_ext, dtype=jnp.int32) % wp
    mask = (col < w).astype(jnp.float32).reshape(1, m_ext)

    kernel = functools.partial(_conv_bn_silu_kernel,
                               wp=wp, m_ext=m_ext, count=float(n * h * w))

    flops = 2 * (2 * num_tiles * cout * (9 * cin) * m_ext) + 12 * num_tiles * cout * m_ext
    bytes_accessed = (2 * slabs.size * 2 + w_t.size * 2 + gb.size * 4 +
                      mask.size * 4 + num_tiles * cout * m_ext * 4)

    out_cm = pl.pallas_call(
        kernel,
        out_shape=jax.ShapeDtypeStruct((num_tiles, cout, m_ext), jnp.float32),
        grid=(2, num_tiles),                      # (phase, tile): 0 = stats, 1 = apply
        in_specs=[
            pl.BlockSpec((1, cin, slab_cols), lambda p, t: (t, 0, 0)),
            pl.BlockSpec((cout, kh * kw * cin), lambda p, t: (0, 0)),
            pl.BlockSpec((cout, 2), lambda p, t: (0, 0)),
            pl.BlockSpec((1, m_ext), lambda p, t: (0, 0)),
        ],
        # During phase 0 the (unwritten) output buffer is parked on block 0, so
        # nothing is flushed to HBM until phase 1 produces real data.
        out_specs=pl.BlockSpec((1, cout, m_ext), lambda p, t: (p * t, 0, 0)),
        scratch_shapes=[pltpu.VMEM((cout, 1), jnp.float32),      # sum  -> scale
                        pltpu.VMEM((cout, 1), jnp.float32)],     # sumsq -> shift
        compiler_params=pltpu.CompilerParams(
            # The phase->stats dependency and the shared stats scratch keep both
            # axes sequential.
            # TODO(synk): per-core partial sums + a cross-core combine would let
            # the tile axis run "parallel" on v7x's 2 TensorCores.
            dimension_semantics=("arbitrary", "arbitrary"),
            vmem_limit_bytes=32 * 1024 * 1024,
        ),
        cost_estimate=pl.CostEstimate(
            flops=int(flops),
            transcendentals=int(num_tiles * cout * m_ext),
            bytes_accessed=int(bytes_accessed)),
    )(slabs, w_t, gb, mask)

    # (T, Cout, TH*(W+2)) -> (N, Cout, H, W): drop the 2 pad columns per row.
    out = out_cm.reshape(n, nrt, cout, tile_h, wp)[:, :, :, :, :w]
    out = jnp.transpose(out, (0, 2, 1, 3, 4)).reshape(n, cout, h, w)
    return out


def reference(x_nchw, weight, bias, gamma, beta):
    """Pure-JAX reference: lax conv (with bias) + train-mode BN + SiLU (NCHW)."""
    y = lax.conv_general_dilated(
        x_nchw.astype(jnp.float32), weight.astype(jnp.float32),
        window_strides=(1, 1), padding=((1, 1), (1, 1)),
        dimension_numbers=("NCHW", "OIHW", "NCHW"),
    ) + bias.reshape(1, -1, 1, 1)
    mean = jnp.mean(y, axis=(0, 2, 3), keepdims=True)
    var = jnp.mean((y - mean) ** 2, axis=(0, 2, 3), keepdims=True)
    yn = (y - mean) * lax.rsqrt(var + EPS)
    yn = yn * gamma.reshape(1, -1, 1, 1) + beta.reshape(1, -1, 1, 1)
    return yn * jax.nn.sigmoid(yn)


if __name__ == "__main__":
    # Shapes consistent with ConvSilu(in_channels=4, out_channels=32, kernel_size=3)
    batch, in_ch, height, width = 2, 4, 16, 16
    out_ch = 32

    key = jax.random.PRNGKey(0)
    k_x, k_w, k_b, k_g, k_be = jax.random.split(key, 5)
    x = jax.random.normal(k_x, (batch, in_ch, height, width), dtype=jnp.float32)
    weight = 0.1 * jax.random.normal(k_w, (out_ch, in_ch, 3, 3), dtype=jnp.float32)
    bias = 0.1 * jax.random.normal(k_b, (out_ch,), dtype=jnp.float32)
    gamma = 1.0 + 0.1 * jax.random.normal(k_g, (out_ch,), dtype=jnp.float32)
    beta = 0.1 * jax.random.normal(k_be, (out_ch,), dtype=jnp.float32)
    # TODO(synk): BatchNorm2d running-stats (momentum) buffer updates are stateful
    # training bookkeeping and are not reproduced; forward math uses batch stats.

    out = jax.block_until_ready(conv_silu(x, weight, bias, gamma, beta))
    ref = jax.block_until_ready(reference(x, weight, bias, gamma, beta))

    assert out.shape == (batch, out_ch, height, width)
    max_err = float(jnp.max(jnp.abs(out - ref)))
    # bf16 MXU operands + one-pass variance => slightly looser tolerance than pure f32.
    assert jnp.allclose(out, ref, atol=3e-2, rtol=3e-2), \
        f"mismatch vs reference (max abs err {max_err})"

    print("KERNEL_OK")
</pallas_src>

<mosaic_0001>
module attributes {stable_mosaic.version = 11 : i64} {
  func.func @_conv_bn_silu_kernel(%arg0: i32, %arg1: i32, %arg2: memref<1x4x332xbf16, #tpu.memory_space<vmem>>, %arg3: memref<32x36xbf16, #tpu.memory_space<vmem>>, %arg4: memref<32x2xf32, #tpu.memory_space<vmem>>, %arg5: memref<1x288xf32, #tpu.memory_space<vmem>>, %arg6: memref<1x32x288xf32, #tpu.memory_space<vmem>>, %arg7: memref<32x1xf32, #tpu.memory_space<vmem>>, %arg8: memref<32x1xf32, #tpu.memory_space<vmem>>) attributes {dimension_semantics = [#tpu.dimension_semantics<arbitrary>, #tpu.dimension_semantics<arbitrary>], iteration_bounds = array<i64: 2, 2>, scalar_prefetch = 0 : i64, scratch_operands = 2 : i64, tpu.core_type = #tpu.core_type<tc>, window_params = [{transform_indices = @transform_0, window_bounds = array<i64: 1, 4, 332>}, {pipeline_mode = #tpu.pipeline_mode<synchronous>, transform_indices = @transform_1, window_bounds = array<i64: 32, 36>}, {pipeline_mode = #tpu.pipeline_mode<synchronous>, transform_indices = @transform_2, window_bounds = array<i64: 32, 2>}, {pipeline_mode = #tpu.pipeline_mode<synchronous>, transform_indices = @transform_3, window_bounds = array<i64: 1, 288>}, {transform_indices = @transform_4, window_bounds = array<i64: 1, 32, 288>}]} {
    %c0 = arith.constant 0 : index
    %c0_0 = arith.constant 0 : index
    %c0_1 = arith.constant 0 : index
    %0 = vector.load %arg2[%c0, %c0_0, %c0_1] : memref<1x4x332xbf16, #tpu.memory_space<vmem>>, vector<1x4x332xbf16>
    %1 = vector.shape_cast %0 : vector<1x4x332xbf16> to vector<4x332xbf16>
    %2 = vector.extract_strided_slice %1 {offsets = [0, 0], sizes = [4, 288], strides = [1, 1]} : vector<4x332xbf16> to vector<4x288xbf16>
    %3 = vector.extract_strided_slice %1 {offsets = [0, 1], sizes = [4, 288], strides = [1, 1]} : vector<4x332xbf16> to vector<4x288xbf16>
    %4 = vector.extract_strided_slice %1 {offsets = [0, 2], sizes = [4, 288], strides = [1, 1]} : vector<4x332xbf16> to vector<4x288xbf16>
    %5 = vector.extract_strided_slice %1 {offsets = [0, 18], sizes = [4, 288], strides = [1, 1]} : vector<4x332xbf16> to vector<4x288xbf16>
    %6 = vector.extract_strided_slice %1 {offsets = [0, 19], sizes = [4, 288], strides = [1, 1]} : vector<4x332xbf16> to vector<4x288xbf16>
    %7 = vector.extract_strided_slice %1 {offsets = [0, 20], sizes = [4, 288], strides = [1, 1]} : vector<4x332xbf16> to vector<4x288xbf16>
    %8 = vector.extract_strided_slice %1 {offsets = [0, 36], sizes = [4, 288], strides = [1, 1]} : vector<4x332xbf16> to vector<4x288xbf16>
    %9 = vector.extract_strided_slice %1 {offsets = [0, 37], sizes = [4, 288], strides = [1, 1]} : vector<4x332xbf16> to vector<4x288xbf16>
    %10 = vector.extract_strided_slice %1 {offsets = [0, 38], sizes = [4, 288], strides = [1, 1]} : vector<4x332xbf16> to vector<4x288xbf16>
    %11 = tpu.concatenate %2, %3, %4, %5, %6, %7, %8, %9, %10 in 0 : vector<4x288xbf16>, vector<4x288xbf16>, vector<4x288xbf16>, vector<4x288xbf16>, vector<4x288xbf16>, vector<4x288xbf16>, vector<4x288xbf16>, vector<4x288xbf16>, vector<4x288xbf16> -> vector<36x288xbf16>
    %c0_2 = arith.constant 0 : index
    %c0_3 = arith.constant 0 : index
    %12 = vector.load %arg3[%c0_2, %c0_3] : memref<32x36xbf16, #tpu.memory_space<vmem>>, vector<32x36xbf16>
    %cst = arith.constant dense<0.000000e+00> : vector<32x288xf32>
    %13 = tpu.matmul %12, %11, %cst {dimension_numbers = #tpu.dot_dimension_numbers<[1], [0], [0], [1], [0, 0, 1, 1], [], []>} : vector<32x36xbf16>, vector<36x288xbf16>, vector<32x288xf32> -> vector<32x288xf32>
    %c0_i32 = arith.constant 0 : i32
    %14 = arith.cmpi eq, %arg0, %c0_i32 : i32
    %c0_i32_4 = arith.constant 0 : i32
    %15 = arith.cmpi eq, %arg1, %c0_i32_4 : i32
    %16 = arith.andi %14, %15 : i1
    %17 = arith.extui %16 : i1 to i32
    %c0_i32_5 = arith.constant 0 : i32
    %18 = arith.cmpi ne, %17, %c0_i32_5 : i32
    scf.if %18 {
      %cst_12 = arith.constant 0.000000e+00 : f32
      %30 = vector.broadcast %cst_12 : f32 to vector<32x1xf32>
      %c0_13 = arith.constant 0 : index
      %c0_14 = arith.constant 0 : index
      %31 = vector.load %arg7[%c0_13, %c0_14] : memref<32x1xf32, #tpu.memory_space<vmem>>, vector<32x1xf32>
      tpu.vector_store %arg7[%c0_13, %c0_14], %30 {strides = array<i32>} : memref<32x1xf32, #tpu.memory_space<vmem>>, vector<32x1xf32>,
      %cst_15 = arith.constant 0.000000e+00 : f32
      %32 = vector.broadcast %cst_15 : f32 to vector<32x1xf32>
      %c0_16 = arith.constant 0 : index
      %c0_17 = arith.constant 0 : index
      %33 = vector.load %arg8[%c0_16, %c0_17] : memref<32x1xf32, #tpu.memory_space<vmem>>, vector<32x1xf32>
      tpu.vector_store %arg8[%c0_16, %c0_17], %32 {strides = array<i32>} : memref<32x1xf32, #tpu.memory_space<vmem>>, vector<32x1xf32>,
    } else {
    }
    %c0_i32_6 = arith.constant 0 : i32
    %19 = arith.cmpi eq, %arg0, %c0_i32_6 : i32
    %20 = arith.extui %19 : i1 to i32
    %c0_i32_7 = arith.constant 0 : i32
    %21 = arith.cmpi ne, %20, %c0_i32_7 : i32
    scf.if %21 {
      %c0_12 = arith.constant 0 : index
      %c0_13 = arith.constant 0 : index
      %30 = vector.load %arg5[%c0_12, %c0_13] : memref<1x288xf32, #tpu.memory_space<vmem>>, vector<1x288xf32>
      %31 = vector.broadcast %30 : vector<1x288xf32> to vector<32x288xf32>
      %32 = arith.mulf %13, %31 : vector<32x288xf32>
      %c0_14 = arith.constant 0 : index
      %c0_15 = arith.constant 0 : index
      %33 = vector.load %arg7[%c0_14, %c0_15] : memref<32x1xf32, #tpu.memory_space<vmem>>, vector<32x1xf32>
      %cst_16 = arith.constant dense<0.000000e+00> : vector<32xf32>
      %34 = vector.multi_reduction <add>, %32, %cst_16 [1] : vector<32x288xf32> to vector<32xf32>
      %35 = vector.shape_cast %34 : vector<32xf32> to vector<32x1xf32>
      %36 = arith.addf %33, %35 : vector<32x1xf32>
      %c0_17 = arith.constant 0 : index
      %c0_18 = arith.constant 0 : index
      %37 = vector.load %arg7[%c0_17, %c0_18] : memref<32x1xf32, #tpu.memory_space<vmem>>, vector<32x1xf32>
      tpu.vector_store %arg7[%c0_17, %c0_18], %36 {strides = array<i32>} : memref<32x1xf32, #tpu.memory_space<vmem>>, vector<32x1xf32>,
      %c0_19 = arith.constant 0 : index
      %c0_20 = arith.constant 0 : index
      %38 = vector.load %arg8[%c0_19, %c0_20] : memref<32x1xf32, #tpu.memory_space<vmem>>, vector<32x1xf32>
      %39 = arith.mulf %32, %32 : vector<32x288xf32>
      %cst_21 = arith.constant dense<0.000000e+00> : vector<32xf32>
      %40 = vector.multi_reduction <add>, %39, %cst_21 [1] : vector<32x288xf32> to vector<32xf32>
      %41 = vector.shape_cast %40 : vector<32xf32> to vector<32x1xf32>
      %42 = arith.addf %38, %41 : vector<32x1xf32>
      %c0_22 = arith.constant 0 : index
      %c0_23 = arith.constant 0 : index
      %43 = vector.load %arg8[%c0_22, %c0_23] : memref<32x1xf32, #tpu.memory_space<vmem>>, vector<32x1xf32>
      tpu.vector_store %arg8[%c0_22, %c0_23], %42 {strides = array<i32>} : memref<32x1xf32, #tpu.memory_space<vmem>>, vector<32x1xf32>,
    } else {
    }
    %c1_i32 = arith.constant 1 : i32
    %22 = arith.cmpi eq, %arg0, %c1_i32 : i32
    %c0_i32_8 = arith.constant 0 : i32
    %23 = arith.cmpi eq, %arg1, %c0_i32_8 : i32
    %24 = arith.andi %22, %23 : i1
    %25 = arith.extui %24 : i1 to i32
    %c0_i32_9 = arith.constant 0 : i32
    %26 = arith.cmpi ne, %25, %c0_i32_9 : i32
    scf.if %26 {
      %c0_12 = arith.constant 0 : index
      %c0_13 = arith.constant 0 : index
      %30 = vector.load %arg7[%c0_12, %c0_13] : memref<32x1xf32, #tpu.memory_space<vmem>>, vector<32x1xf32>
      %cst_14 = arith.constant 0.001953125 : f32
      %31 = vector.broadcast %cst_14 : f32 to vector<32x1xf32>
      %32 = arith.mulf %30, %31 : vector<32x1xf32>
      %c0_15 = arith.constant 0 : index
      %c0_16 = arith.constant 0 : index
      %33 = vector.load %arg8[%c0_15, %c0_16] : memref<32x1xf32, #tpu.memory_space<vmem>>, vector<32x1xf32>
      %cst_17 = arith.constant 0.001953125 : f32
      %34 = vector.broadcast %cst_17 : f32 to vector<32x1xf32>
      %35 = arith.mulf %33, %34 : vector<32x1xf32>
      %36 = arith.mulf %32, %32 : vector<32x1xf32>
      %37 = arith.subf %35, %36 : vector<32x1xf32>
      %c0_18 = arith.constant 0 : index
      %c0_19 = arith.constant 0 : index
      %38 = vector.load %arg4[%c0_18, %c0_19] : memref<32x2xf32, #tpu.memory_space<vmem>>, vector<32x1xf32>
      %cst_20 = arith.constant 9.99999974E-6 : f32
      %39 = vector.broadcast %cst_20 : f32 to vector<32x1xf32>
      %40 = arith.addf %37, %39 : vector<32x1xf32>
      %41 = math.rsqrt %40 : vector<32x1xf32>
      %42 = arith.mulf %38, %41 : vector<32x1xf32>
      %c0_21 = arith.constant 0 : index
      %c1 = arith.constant 1 : index
      %43 = vector.load %arg4[%c0_21, %c1] : memref<32x2xf32, #tpu.memory_space<vmem>>, vector<32x1xf32>
      %44 = arith.mulf %32, %42 : vector<32x1xf32>
      %45 = arith.subf %43, %44 : vector<32x1xf32>
      %c0_22 = arith.constant 0 : index
      %c0_23 = arith.constant 0 : index
      %46 = vector.load %arg7[%c0_22, %c0_23] : memref<32x1xf32, #tpu.memory_space<vmem>>, vector<32x1xf32>
      tpu.vector_store %arg7[%c0_22, %c0_23], %42 {strides = array<i32>} : memref<32x1xf32, #tpu.memory_space<vmem>>, vector<32x1xf32>,
      %c0_24 = arith.constant 0 : index
      %c0_25 = arith.constant 0 : index
      %47 = vector.load %arg8[%c0_24, %c0_25] : memref<32x1xf32, #tpu.memory_space<vmem>>, vector<32x1xf32>
      tpu.vector_store %arg8[%c0_24, %c0_25], %45 {strides = array<i32>} : memref<32x1xf32, #tpu.memory_space<vmem>>, vector<32x1xf32>,
    } else {
    }
    %c1_i32_10 = arith.constant 1 : i32
    %27 = arith.cmpi eq, %arg0, %c1_i32_10 : i32
    %28 = arith.extui %27 : i1 to i32
    %c0_i32_11 = arith.constant 0 : i32
    %29 = arith.cmpi ne, %28, %c0_i32_11 : i32
    scf.if %29 {
      %c0_12 = arith.constant 0 : index
      %c0_13 = arith.constant 0 : index
      %30 = vector.load %arg7[%c0_12, %c0_13] : memref<32x1xf32, #tpu.memory_space<vmem>>, vector<32x1xf32>
      %31 = vector.broadcast %30 : vector<32x1xf32> to vector<32x288xf32>
      %32 = arith.mulf %13, %31 : vector<32x288xf32>
      %c0_14 = arith.constant 0 : index
      %c0_15 = arith.constant 0 : index
      %33 = vector.load %arg8[%c0_14, %c0_15] : memref<32x1xf32, #tpu.memory_space<vmem>>, vector<32x1xf32>
      %34 = vector.broadcast %33 : vector<32x1xf32> to vector<32x288xf32>
      %35 = arith.addf %32, %34 : vector<32x288xf32>
      %cst_16 = arith.constant 0.000000e+00 : f32
      %36 = vector.broadcast %cst_16 : f32 to vector<32x288xf32>
      %37 = arith.subf %36, %35 : vector<32x288xf32>
      %38 = math.exp %37 : vector<32x288xf32>
      %cst_17 = arith.constant 1.000000e+00 : f32
      %39 = vector.broadcast %cst_17 : f32 to vector<32x288xf32>
      %40 = arith.addf %39, %38 : vector<32x288xf32>
      %41 = tpu.reciprocal %40 {approx = true} : vector<32x288xf32> -> vector<32x288xf32>
      %42 = arith.mulf %35, %41 : vector<32x288xf32>
      %c0_18 = arith.constant 0 : index
      %c0_19 = arith.constant 0 : index
      %c0_20 = arith.constant 0 : index
      %43 = vector.load %arg6[%c0_18, %c0_19, %c0_20] : memref<1x32x288xf32, #tpu.memory_space<vmem>>, vector<1x32x288xf32>
      %44 = vector.shape_cast %43 : vector<1x32x288xf32> to vector<32x288xf32>
      %45 = vector.shape_cast %42 : vector<32x288xf32> to vector<1x32x288xf32>
      tpu.vector_store %arg6[%c0_18, %c0_19, %c0_20], %45 {strides = array<i32>} : memref<1x32x288xf32, #tpu.memory_space<vmem>>, vector<1x32x288xf32>,
    } else {
    }
    return
  }
  func.func @transform_0(%arg0: i32, %arg1: i32) -> (i32, i32, i32) {
    %c0_i32 = arith.constant 0 : i32
    %c0_i32_0 = arith.constant 0 : i32
    %c0_i32_1 = arith.constant 0 : i32
    return %arg1, %c0_i32, %c0_i32_0 : i32, i32, i32
  }
  func.func @transform_1(%arg0: i32, %arg1: i32) -> (i32, i32) {
    %c0_i32 = arith.constant 0 : i32
    %c0_i32_0 = arith.constant 0 : i32
    %c0_i32_1 = arith.constant 0 : i32
    return %c0_i32, %c0_i32_0 : i32, i32
  }
  func.func @transform_2(%arg0: i32, %arg1: i32) -> (i32, i32) {
    %c0_i32 = arith.constant 0 : i32
    %c0_i32_0 = arith.constant 0 : i32
    %c0_i32_1 = arith.constant 0 : i32
    return %c0_i32, %c0_i32_0 : i32, i32
  }
  func.func @transform_3(%arg0: i32, %arg1: i32) -> (i32, i32) {
    %c0_i32 = arith.constant 0 : i32
    %c0_i32_0 = arith.constant 0 : i32
    %c0_i32_1 = arith.constant 0 : i32
    return %c0_i32, %c0_i32_0 : i32, i32
  }
  func.func @transform_4(%arg0: i32, %arg1: i32) -> (i32, i32, i32) {
    %0 = arith.muli %arg0, %arg1 : i32
    %c0_i32 = arith.constant 0 : i32
    %c0_i32_0 = arith.constant 0 : i32
    %c0_i32_1 = arith.constant 0 : i32
    return %0, %c0_i32, %c0_i32_0 : i32, i32, i32
  }
}

</mosaic_0001>

<bundles_post_ra>
// kernel: tpu_custom_call.1
= control target key start
LH: loop header
LB: loop body
LE: loop exit
PB: predicated region body
PF: predicated region fallthrough
CT: control target
= control target key end

     0   :  { %9 = vsyncpa [#allocation5], 0  ;;  %s1676_s0 = inlined_call_operand.vmem [shape: bf16[2,4,332], index: 0, kind: input, shape index: {}]   ;;  %s1677_s1 = inlined_call_operand.vmem [shape: bf16[32,36], index: 1, kind: input, shape index: {}]   ;;  %s1678_s2 = inlined_call_operand.vmem [shape: f32[32,2], index: 2, kind: input, shape index: {}]   ;;  %s1679_s3 = inlined_call_operand.vmem [shape: f32[1,288], index: 3, kind: input, shape index: {}]   ;;  %s1680_s4 = inlined_call_operand.hbm [shape: f32[2,32,288], index: 4, kind: output, shape index: {}]  }
   0x1   :  { %11 = vsyncpa [#allocation5 + $0x1], 0  ;;  %s1286_s15 = smov 0   ;;  %s1288_s16 = smov 0  }
   0x2   :  { %s1290_s17 = smov 0   ;;  %s1292_s18 = smov 0  }
   0x3   :  { %s1294_s19 = smov 0   ;;  %s1296_s20 = smov 0  }
   0x4   :  { %s1298_s21 = smov 0   ;;  %s1300_s22 = smov 0  }
   0x5 LB: > { %s964_s23 = sadd.s32 4294967295, %s1242_s22   ;;  %s965_s24 = sadd.s32 4294967294, %s1242_s22   ;;  %s1242_s22 = sphi %s1300_s22, %s17_s22   ;;  %s1238_s21 = sphi %s1298_s21, %s1690_s21   ;;  %s1234_s20 = sphi %s1296_s20, %s1689_s20   ;;  %s1230_s19 = sphi %s1294_s19, %s1688_s19   ;;  %s1226_s18 = sphi %s1292_s18, %s1687_s18   ;;  %s1222_s17 = sphi %s1290_s17, %s1686_s17   ;;  %s1218_s16 = sphi %s1288_s16, %s1685_s16   ;;  %s1214_s15 = sphi %s1286_s15, %s1684_s15  }
   0x6   : > { %s26_s25 = sadd.s32 1, %s1234_s20  ;;  %s29_s26 = sadd.s32 1, %s1238_s21 }
   0x7   : > { %p27_p0 = scmp.ge.s32.totalorder %s26_s25, 2  ;;  %s122_s27 = smul.u32 %s1234_s20, %s1238_s21 }
   0x8   : > { %p137_p1 = scmp.ne.s32.totalorder %s1222_s17, %s1218_s16  ;;  %p138_p2 = scmp.eq.s32.totalorder %s964_s23, 3 }
   0x9   : > { %s1692_s25 = smov (%p27_p0, %s26_s25), 0  ;;  %s1694_s26 = smov (!%p27_p0, %s29_s26), %s1238_s21 }
   0xa   : > { %p143_p3 = scmp.ne.s32.totalorder %s1218_s16, %s1214_s15  ;;  %p31_p4 = scmp.ge.s32.totalorder %s1694_s26, 2 }
   0xb   : > { %p144_p5 = scmp.eq.s32.totalorder %s965_s24, 3  ;;  %p1339_p6 = por %p138_p2, %p137_p1 }
   0xc   : > { %p968_p7 = scmp.ge.s32.totalorder %s1242_s22, 1  ;;  %s1696_s26 = smov (%p31_p4, %s1694_s26), 0 }
   0xd   : > { %p1346_p8 = por %p144_p5, %p143_p3  ;;  %p179_p9 = scmp.lt.s32.totalorder %s1242_s22, 5 }
   0xe   : > { %s123_s30 = smul.u32 %s1696_s26, %s1692_s25  ;;  %s127_s6 = sadd.s32 1, %s1222_s17 }
   0xf   : > { %p180_p10 = pnand %p968_p7, %p179_p9 }
  0x10   : > { %s124_s5 = ssub.s32 %s122_s27, %s123_s30  ;;  %p205_p12 = scmp.lt.s32.totalorder (!%p180_p10), %s1226_s18, 1 }
  0x11   : > { %p125_p11 = scmp.eq.s32.totalorder %s124_s5, 0  ;;  %183 = sbr.rel (%p180_p10) target bundleno = 1073 (0x431), region = 36 }
  0x12   : > { %s202_s13 = sand.u32 (!%p180_p10), 1, %s1218_s16   ;;  %s1245_s23 = smov (!%p180_p10), 109  }
  0x13   : > { %s1355_s7 = scalar_select %p125_p11, %s1222_s17, %s127_s6  }
  0x14   : > { %s1368_s14 = smul.u32 (!%p180_p10), 96, %s202_s13  ;;  %s1246_s24 = smov (!%p180_p10), 90  }
  0x15   : > { %s1247_s27 = smov (!%p180_p10), 108   ;;  %s1248_s30 = smov (!%p180_p10), 92  }
  0x16   : > { %v218_v0 = vlaneseq  ;;  %v1244_v1 = vmov 1983009808   ;;  %s206_s8 = scalar_select %p205_p12, %s1226_s18, 1  ;;  %v1394_v17 = vld [vmem:[%s1677_s1] sm:$0xff]   ;;  %vm379_vm0 = vcmask 293888   ;;  %v1251_v18 = vmov 0  }
  0x17   : > { %v216_v2 = vunpack.c.l.s4 %v1244_v1  ;;  %s1249_s5 = smov 91   ;;  %s1250_s6 = smov 127   ;;  %427 = vmatprep.mubr.bf16.mxu0 %v1251_v18  ;;  %993 = vmatprep.mubr.msk.bf16.mxu1 %vm379_vm0, %v1394_v17  ;;  %vm314_vm1 = vcmask 1041408   ;;  %vm311_vm2 = vcmask 736256   ;;  %vm284_vm3 = vcmask 883712  }
  0x18   : > { %v1359_v3 = vshrl.u32 %v218_v0, 7  ;;  %s999_s9 = smul.u32 6, %s206_s8  ;;  %s1252_s10 = smov 126   ;;  %vm293_vm4 = vcmask 752640   ;;  %vm275_vm5 = vcmask 891904   ;;  %vm324_vm6 = vcmask 1043456  }
  0x19   : > { %v217_v4 = vunpack.c.0.s8 %v216_v2  ;;  %s1253_s11 = smov 110   ;;  %vm302_vm7 = vcmask 744448   ;;  %vm331_vm8 = vcmask 1045504   ;;  %vm245_vm9 = vcmask 1039360   ;;  %p497_p13 = scmp.eq.s32.totalorder %s1230_s19, 0 }
  0x1a   : > { %s209_s12 = scalar_lea.vmem %s1676_s0, %s999_s9  ;;  %vm256_vm10 = vcmask 1031168   ;;  %vm266_vm11 = vcmask 900096   ;;  %p498_p0 = scmp.eq.s32.totalorder %s1226_s18, 0 }
  0x1b   : > { %v220_v5 = vsub.s32 %v217_v4, %v1359_v3  ;;  %v212_v6 = vld [vmem:[%s209_s12] sm:$0x3f] }
  0x1c   : > { %v214_v8 = vcombine.high %v212_v6, %v212_v6  ;;  %v230_v10 = vcombine.low %v212_v6, %v212_v6  ;;  %p1445_p1 = pnand %p498_p0, %p497_p13 }
  0x1d   : > { %v1370_v7 = vrot.slane %v212_v6, %v220_v5 }
  0x1e   : > { %v1374_v9 = vrot.slane %v214_v8, %v220_v5  ;;  %v237_v12 = vrot.slane %v230_v10, %v220_v5 }
  0x1f   : > { %269 = vrot.lane.b32.xlu1 %v1370_v7, %s1245_s23  ;;  %305 = vrot.lane.b32.xlu0 %v1370_v7, %s1246_s24  ;;  %v1380_v11 = vcombine.high %v1370_v7, %v1370_v7  ;;  %v248_v14 = vcombine.low %v1370_v7, %v1370_v7 }
  0x20   : > { %v238_v13 = vcombine.high %v237_v12, %v237_v12  ;;  %v249_v15 = vcombine.low %v1374_v9, %v1374_v9  ;;  %v259_v16 = vcombine.low %v237_v12, %v237_v12 }
  0x23   : > { %282 = vrot.lane.b32.xlu0 %v1370_v7, %s1247_s27  ;;  %309 = vrot.lane.b32.xlu1 %v1374_v9, %s1246_s24 }
  0x27   : > { %307 = vrot.lane.b32.xlu0 %v1380_v11, %s1246_s24  ;;  %271 = vrot.lane.b32.xlu1 %v1380_v11, %s1245_s23 }
  0x2b   : > { %273 = vrot.lane.b32.xlu0 %v1374_v9, %s1245_s23  ;;  %280 = vrot.lane.b32.xlu1 %v238_v13, %s1247_s27 }
  0x2f   : > { %278 = vrot.lane.b32.xlu0 %v237_v12, %s1247_s27  ;;  %289 = vrot.lane.b32.xlu1 %v1370_v7, %s1248_s30  ;;  %s1474_s27 = scalar_lea.vmem [#allocation4], %s1368_s14 }
  0x33   : > { %287 = vrot.lane.b32.xlu1 %v248_v14, %s1248_s30  ;;  %291 = vrot.lane.b32.xlu0 %v249_v15, %s1248_s30 }
  0x37   : > { %300 = vrot.lane.b32.xlu1 %v248_v14, %s1249_s5  ;;  %298 = vrot.lane.b32.xlu0 %v237_v12, %s1249_s5 }
  0x3b   : > { %241 = vrot.lane.b32.xlu1 %v238_v13, %s1250_s6  ;;  %296 = vrot.lane.b32.xlu0 %v259_v16, %s1249_s5 }
  0x3f   : > { %239 = vrot.lane.b32.xlu1 %v237_v12, %s1250_s6  ;;  %243 = vrot.lane.b32.xlu0 %v1370_v7, %s1250_s6 }
  0x43   : > { %254 = vrot.lane.b32.xlu1 %v249_v15, %s1252_s10  ;;  %252 = vrot.lane.b32.xlu0 %v1370_v7, %s1252_s10 }
  0x47   : > { %262 = vrot.lane.b32.xlu1 %v237_v12, %s1253_s11  ;;  %250 = vrot.lane.b32.xlu0 %v248_v14, %s1252_s10 }
  0x4b   : > { %260 = vrot.lane.b32.xlu1 %v259_v16, %s1253_s11  ;;  %264 = vrot.lane.b32.xlu0 %v248_v14, %s1253_s11  ;;  %v1091_v16 = vld [vmem:[%s1677_s1 + $0x8] sm:$0xff]  }
  0x91   : > { %v270_v19 = vpop.permute.xlu1 %269  ;;  %v306_v20 = vpop.permute.xlu0 %305 }
  0x95   : > { %v283_v21 = vpop.permute.xlu0 %282  ;;  %v310_v22 = vpop.permute.xlu1 %309 }
  0x96   : > { %997 = vmatprep.subr.msk.bf16.mxu1 %vm314_vm1, %v310_v22  ;;  %v393_v23 = vsel %vm314_vm1, %v310_v22, 0 }
  0x97   : > { %988 = vmatpush3.bf16.msra.mxu1 %v393_v23 }
  0x99   : > { %v308_v24 = vpop.permute.xlu0 %307  ;;  %v272_v25 = vpop.permute.xlu1 %271 }
  0x9a   : > { %v313_v26 = vsel %vm311_vm2, %v308_v24, %v310_v22  ;;  %v312_v27 = vsel %vm311_vm2, %v306_v20, %v308_v24  ;;  %v276_v49 = vsel %vm275_vm5, %v270_v19, %v272_v25 }
  0x9b   : > { %972 = vmatprep.subr.msk.bf16.mxu0 %vm314_vm1, %v313_v26  ;;  %v387_v28 = vsel %vm314_vm1, %v312_v27, 0 }
  0x9c   : > { %406 = vmatpush1.bf16.msra.mxu0 %v387_v28 }
  0x9d   : > { %v274_v29 = vpop.permute.xlu0 %273  ;;  %v281_v30 = vpop.permute.xlu1 %280 }
  0x9e   : > { %v277_v35 = vsel %vm275_vm5, %v272_v25, %v274_v29  ;;  %v286_v36 = vsel %vm284_vm3, %v281_v30, %v283_v21  ;;  %v349_v38 = vsel %vm314_vm1, %v274_v29, %v283_v21 }
  0x9f   : > { %v346_v39 = vsel %vm314_vm1, %v277_v35, %v286_v36 }
  0xa1   : > { %v279_v31 = vpop.permute.xlu0 %278  ;;  %v290_v32 = vpop.permute.xlu1 %289 }
  0xa2   : > { %v285_v43 = vsel %vm284_vm3, %v279_v31, %v281_v30 }
  0xa3   : > { %v343_v50 = vsel %vm314_vm1, %v276_v49, %v285_v43 }
  0xa5   : > { %v288_v33 = vpop.permute.xlu1 %287  ;;  %v292_v34 = vpop.permute.xlu0 %291 }
  0xa6   : > { %v295_v37 = vsel %vm293_vm4, %v290_v32, %v292_v34  ;;  %v355_v40 = vsel %vm324_vm6, %v349_v38, %v292_v34  ;;  %v294_v47 = vsel %vm293_vm4, %v288_v33, %v290_v32 }
  0xa7   : > { %v353_v46 = vsel %vm324_vm6, %v346_v39, %v295_v37  ;;  %v351_v54 = vsel %vm324_vm6, %v343_v50, %v294_v47 }
  0xa9   : > { %v301_v41 = vpop.permute.xlu1 %300  ;;  %v299_v42 = vpop.permute.xlu0 %298 }
  0xaa   : > { %v304_v44 = vsel %vm302_vm7, %v299_v42, %v301_v41  ;;  %v363_v45 = vsel %vm331_vm8, %v355_v40, %v301_v41 }
  0xab   : > { %989 = vmatprep.subr.bf16.mxu1 %v363_v45  ;;  %v360_v48 = vsel %vm331_vm8, %v353_v46, %v304_v44 }
  0xac   : > { %407 = vmatprep.subr.bf16.mxu0 %v360_v48  ;;  %990 = vmatpush3.bf16.msra.mxu1 %v363_v45 }
  0xad   : > { %v242_v51 = vpop.permute.xlu1 %241  ;;  %v297_v52 = vpop.permute.xlu0 %296 }
  0xae   : > { %v303_v53 = vsel %vm302_vm7, %v297_v52, %v299_v42 }
  0xaf   : > { %v357_v55 = vsel %vm331_vm8, %v351_v54, %v303_v53 }
  0xb0   : > { %408 = vmatpush1.bf16.msra.mxu0 %v357_v55 }
  0xb1   : > { %v240_v56 = vpop.permute.xlu1 %239  ;;  %v244_v57 = vpop.permute.xlu0 %243 }
  0xb2   : > { %v247_v60 = vsel %vm245_vm9, %v242_v51, %v244_v57  ;;  %v246_v63 = vsel %vm245_vm9, %v240_v56, %v242_v51  ;;  %v323_v4 = vsel %vm314_vm1, %v1374_v9, %v244_v57 }
  0xb3   : > { %v320_v2 = vsel %vm314_vm1, %v1380_v11, %v247_v60  ;;  %v317_v5 = vsel %vm314_vm1, %v1370_v7, %v246_v63 }
  0xb5   : > { %v255_v58 = vpop.permute.xlu1 %254  ;;  %v253_v59 = vpop.permute.xlu0 %252 }
  0xb6   : > { %v258_v0 = vsel %vm256_vm10, %v253_v59, %v255_v58  ;;  %v330_v6 = vsel %vm324_vm6, %v323_v4, %v255_v58 }
  0xb7   : > { %v328_v12 = vsel %vm324_vm6, %v320_v2, %v258_v0 }
  0xb9   : > { %v263_v61 = vpop.permute.xlu1 %262  ;;  %v251_v62 = vpop.permute.xlu0 %250 }
  0xba   : > { %v257_v1 = vsel %vm256_vm10, %v251_v62, %v253_v59 }
  0xbb   : > { %v326_v11 = vsel %vm324_vm6, %v317_v5, %v257_v1 }
  0xbd   : > { %v261_v8 = vpop.permute.xlu1 %260  ;;  %v265_v10 = vpop.permute.xlu0 %264 }
  0xbe   : > { %v267_v13 = vsel %vm266_vm11, %v261_v8, %v263_v61  ;;  %v268_v14 = vsel %vm266_vm11, %v263_v61, %v265_v10  ;;  %v339_v15 = vsel %vm331_vm8, %v330_v6, %v265_v10 }
  0xbf   : > { %991 = vmatprep.subr.bf16.mxu1 %v339_v15  ;;  %v336_v9 = vsel %vm331_vm8, %v328_v12, %v268_v14  ;;  %v333_v7 = vsel %vm331_vm8, %v326_v11, %v267_v13 }
  0xc0   : > { %409 = vmatprep.subr.bf16.mxu0 %v336_v9  ;;  %992 = vmatpush3.bf16.msra.mxu1 %v339_v15 }
  0xc1   : > { %410 = vmatpush1.bf16.msra.mxu0 %v333_v7 }
  0xc3   : > { %994 = vmatmul.mubr.msk.bf16.vlgmr.msra.gmra.mxu1 %vm379_vm0, %v1091_v16 }
  0xc4   : > { %973 = vmatmul.mubr.msk.bf16.vlgmr.msra.gmra.mxu0 %vm379_vm0, %v1394_v17 }
  0xc5   : > { %437 = vmatprep.mubr.bf16.mxu0 %v1251_v18 }
  0xcc   : > { %974 = vmatmul.mubr.msk.bf16.gmra.mxu0 %vm379_vm0, %v1091_v16 }
 0x183   : > { %v1449_v19 = vpop.f32.mrf.mxu1 }
 0x184   : > { %v1451_v20 = vpop.f32.mrf.mxu0 }
 0x185   : > { %v1453_v21 = vpop.f32.mrf.mxu1 }
 0x186   : > { %v1455_v22 = vpop.f32.mrf.mxu0 }
 0x187   : > { %v1457_v17 = vpop.f32.mrf.mxu1 }
 0x188   : > { %v1459_v18 = vpop.f32.mrf.mxu0 }
 0x189   : > { %v1461_v23 = vpop.f32.mrf.mxu1 }
 0x18a   : > { %v1463_v24 = vpop.f32.mrf.mxu0 }
 0x18c   : > { %v1465_v25 = vpop.f32.mrf.mxu0 }
 0x18e   : > { %v1467_v26 = vpop.f32.mrf.mxu0  ;;  %502 = sbr.rel (%p1445_p1) target bundleno = 408 (0x198), region = 40 }
 0x190   : > { %v1469_v27 = vpop.f32.mrf.mxu0 }
 0x192   : > { %v1471_v28 = vpop.f32.mrf.mxu0 }
 0x193   : > { %vm503_vm12 = vcmask 7168   ;;  %v1254_v29 = vmov 0.0  }
 0x194   : > { %504 = vst.msk [vmem:[#allocation2] sm:$0xff] %vm503_vm12, %v1254_v29  ;;  %505 = vst.msk [vmem:[#allocation2 + $0x8] sm:$0xff] %vm503_vm12, %v1254_v29 }
 0x195   : > { %506 = vst.msk [vmem:[#allocation2 + $0x10] sm:$0xff] %vm503_vm12, %v1254_v29  ;;  %507 = vst.msk [vmem:[#allocation2 + $0x18] sm:$0xff] %vm503_vm12, %v1254_v29 }
 0x196   : > { %508 = vst.msk [vmem:[#allocation3] sm:$0xff] %vm503_vm12, %v1254_v29  ;;  %509 = vst.msk [vmem:[#allocation3 + $0x8] sm:$0xff] %vm503_vm12, %v1254_v29 }
 0x197   : > { %510 = vst.msk [vmem:[#allocation3 + $0x10] sm:$0xff] %vm503_vm12, %v1254_v29  ;;  %511 = vst.msk [vmem:[#allocation3 + $0x18] sm:$0xff] %vm503_vm12, %v1254_v29 }
 0x198 PF: > { %p977_p2 = scmp.ne.s32.totalorder %s1230_s19, 0 }
 0x19a   : > { %514 = sbr.rel (%p977_p2) target bundleno = 579 (0x243), region = 44 }
 0x19f   : > { %v515_v30 = vld [vmem:[%s1679_s3] sm:$0x7]  ;;  %v519_v31 = vsub.s32 0, %v1359_v3  ;;  %v523_v32 = vsub.s32 1, %v1359_v3  ;;  %v527_v33 = vsub.s32 2, %v1359_v3  ;;  %vm549_vm13 = vcmask 261120  }
 0x1a0   : > { %vm573_vm14 = vcmask 7168  }
 0x1a1   : > { %v520_v34 = vrot.slane %v515_v30, %v519_v31  ;;  %v524_v35 = vrot.slane %v515_v30, %v523_v32  ;;  %v528_v36 = vrot.slane %v515_v30, %v527_v33  ;;  %v546_v33 = vld [vmem:[#allocation2 + $0x10] sm:$0xff] }
 0x1a3   : > { %v538_v37 = vmul.f32 %v520_v34, %v1465_v25  ;;  %v539_v38 = vmul.f32 %v524_v35, %v1467_v26  ;;  %v540_v39 = vmul.f32 %v1449_v19, %v528_v36  ;;  %v532_v40 = vmul.f32 %v520_v34, %v1451_v20 }
 0x1a4   : > { %v533_v41 = vmul.f32 %v524_v35, %v1455_v22  ;;  %v534_v42 = vmul.f32 %v528_v36, %v1453_v21  ;;  %v541_v43 = vmul.f32 %v520_v34, %v1469_v27  ;;  %v542_v3 = vmul.f32 %v524_v35, %v1471_v28 }
 0x1a5   : > { %v559_v44 = vadd.f32 %v539_v38, %v538_v37  ;;  %v560_v45 = vsel %vm549_vm13, %v540_v39, 0.0  ;;  %v543_v46 = vmul.f32 %v1457_v17, %v528_v36  ;;  %v535_v47 = vmul.f32 %v520_v34, %v1459_v18  ;;  %v544_v34 = vld [vmem:[#allocation2] sm:$0xff] }
 0x1a6   : > { %v548_v48 = vadd.f32 %v533_v41, %v532_v40  ;;  %v550_v49 = vsel %vm549_vm13, %v534_v42, 0.0  ;;  %v564_v50 = vadd.f32 %v542_v3, %v541_v43  ;;  %v536_v51 = vmul.f32 %v524_v35, %v1463_v24 }
 0x1a7   : > { %v561_v52 = vadd.f32 %v560_v45, %v559_v44  ;;  %v565_v53 = vsel %vm549_vm13, %v543_v46, 0.0  ;;  %v537_v54 = vmul.f32 %v528_v36, %v1461_v23  ;;  %v585_v55 = vmul.f32 %v535_v47, %v535_v47  ;;  %v579_v44 = vld [vmem:[#allocation3 + $0x8] sm:$0xff]  ;;  %v578_v45 = vld [vmem:[#allocation3] sm:$0xff] }
 0x1a8   : > { %v551_v56 = vadd.f32 %v550_v49, %v548_v48  ;;  %v566_v57 = vadd.f32 %v565_v53, %v564_v50  ;;  %v554_v58 = vadd.f32 %v536_v51, %v535_v47  ;;  %v586_v59 = vmul.f32 %v536_v51, %v536_v51  ;;  %v581_v50 = vld [vmem:[#allocation3 + $0x18] sm:$0xff]  ;;  %v580_v51 = vld [vmem:[#allocation3 + $0x10] sm:$0xff] }
 0x1a9   : > { %562 = vadd.xlane.f32.xlu1 %v561_v52  ;;  %v555_v60 = vsel %vm549_vm13, %v537_v54, 0.0  ;;  %v587_v61 = vmul.f32 %v537_v54, %v537_v54  ;;  %v582_v62 = vmul.f32 %v532_v40, %v532_v40  ;;  %v583_v63 = vmul.f32 %v533_v41, %v533_v41  ;;  %v545_v40 = vld [vmem:[#allocation2 + $0x8] sm:$0xff] }
 0x1aa   : > { %552 = vadd.xlane.f32.xlu0 %v551_v56  ;;  %v556_v0 = vadd.f32 %v555_v60, %v554_v58  ;;  %v599_v1 = vadd.f32 %v586_v59, %v585_v55  ;;  %v584_v2 = vmul.f32 %v534_v42, %v534_v42  ;;  %v591_v4 = vmul.f32 %v541_v43, %v541_v43 }
 0x1ab   : > { %v600_v5 = vsel %vm549_vm13, %v587_v61, 0.0  ;;  %v594_v6 = vadd.f32 %v583_v63, %v582_v62  ;;  %v592_v8 = vmul.f32 %v542_v3, %v542_v3  ;;  %v593_v10 = vmul.f32 %v543_v46, %v543_v46 }
 0x1ac   : > { %v595_v12 = vsel %vm549_vm13, %v584_v2, 0.0  ;;  %v588_v13 = vmul.f32 %v538_v37, %v538_v37  ;;  %v589_v14 = vmul.f32 %v539_v38, %v539_v38  ;;  %v601_v15 = vadd.f32 %v600_v5, %v599_v1 }
 0x1ad   : > { %567 = vadd.xlane.f32.xlu1 %v566_v57  ;;  %v609_v11 = vadd.f32 %v592_v8, %v591_v4  ;;  %v590_v9 = vmul.f32 %v540_v39, %v540_v39  ;;  %v596_v7 = vadd.f32 %v595_v12, %v594_v6  ;;  %v610_v16 = vsel %vm549_vm13, %v593_v10, 0.0  ;;  %v547_v39 = vld [vmem:[#allocation2 + $0x18] sm:$0xff] }
 0x1ae   : > { %557 = vadd.xlane.f32.xlu0 %v556_v0  ;;  %v604_v29 = vadd.f32 %v589_v14, %v588_v13 }
 0x1af   : > { %v605_v30 = vsel %vm549_vm13, %v590_v9, 0.0  ;;  %v611_v31 = vadd.f32 %v610_v16, %v609_v11 }
 0x1b0   : > { %v606_v32 = vadd.f32 %v605_v30, %v604_v29 }
 0x1b1   : > { %602 = vadd.xlane.f32.xlu1 %v601_v15 }
 0x1b2   : > { %597 = vadd.xlane.f32.xlu0 %v596_v7 }
 0x1b5   : > { %612 = vadd.xlane.f32.xlu1 %v611_v31 }
 0x1b6   : > { %607 = vadd.xlane.f32.xlu0 %v606_v32 }
 0x232   : > { %v563_v35 = vpop.xlane.xlu1 %562 }
 0x233   : > { %v571_v36 = vadd.f32 %v563_v35, %v546_v33  ;;  %v553_v37 = vpop.xlane.xlu0 %552 }
 0x234   : > { %v569_v38 = vadd.f32 %v553_v37, %v544_v34 }
 0x235   : > { %576 = vst.msk [vmem:[#allocation2 + $0x10] sm:$0xff] %vm573_vm14, %v571_v36 }
 0x236   : > { %574 = vst.msk [vmem:[#allocation2] sm:$0xff] %vm573_vm14, %v569_v38  ;;  %v568_v41 = vpop.xlane.xlu1 %567 }
 0x237   : > { %v572_v42 = vadd.f32 %v568_v41, %v547_v39  ;;  %v558_v43 = vpop.xlane.xlu0 %557 }
 0x238   : > { %v570_v3 = vadd.f32 %v558_v43, %v545_v40 }
 0x239   : > { %577 = vst.msk [vmem:[#allocation2 + $0x18] sm:$0xff] %vm573_vm14, %v572_v42 }
 0x23a   : > { %575 = vst.msk [vmem:[#allocation2 + $0x8] sm:$0xff] %vm573_vm14, %v570_v3  ;;  %v603_v46 = vpop.xlane.xlu1 %602 }
 0x23b   : > { %v615_v47 = vadd.f32 %v603_v46, %v579_v44  ;;  %v598_v48 = vpop.xlane.xlu0 %597 }
 0x23c   : > { %v614_v49 = vadd.f32 %v598_v48, %v578_v45 }
 0x23d   : > { %619 = vst.msk [vmem:[#allocation3 + $0x8] sm:$0xff] %vm573_vm14, %v615_v47 }
 0x23e   : > { %618 = vst.msk [vmem:[#allocation3] sm:$0xff] %vm573_vm14, %v614_v49  ;;  %v613_v52 = vpop.xlane.xlu1 %612 }
 0x23f   : > { %v617_v53 = vadd.f32 %v613_v52, %v581_v50  ;;  %v608_v54 = vpop.xlane.xlu0 %607 }
 0x240   : > { %v616_v55 = vadd.f32 %v608_v54, %v580_v51 }
 0x241   : > { %621 = vst.msk [vmem:[#allocation3 + $0x18] sm:$0xff] %vm573_vm14, %v617_v53 }
 0x242   : > { %620 = vst.msk [vmem:[#allocation3 + $0x10] sm:$0xff] %vm573_vm14, %v616_v55 }
 0x243 PF: > { %p622_p3 = scmp.eq.s32.totalorder %s1230_s19, 1 }
 0x245   : > { %p623_p4 = pnand %p622_p3, %p498_p0 }
 0x246   : > { %s1255_s24 = smov (!%p623_p4), 1   ;;  %s1256_s30 = smov (!%p623_p4), 127  }
 0x247   : > { %626 = sbr.rel (%p623_p4) target bundleno = 856 (0x358), region = 48 }
 0x24c   : > { %v627_v56 = vld [vmem:[#allocation2] sm:$0xff]  ;;  %v629_v60 = vld [vmem:[#allocation2 + $0x10] sm:$0xff]  ;;  %v628_v0 = vld [vmem:[#allocation2 + $0x8] sm:$0xff]  ;;  %vm691_vm15 = vcmask 7168  }
 0x24d   : > { %v635_v57 = vld [vmem:[#allocation3] sm:$0xff]  ;;  %v631_v58 = vmul.f32 0.001953125, %v627_v56  ;;  %v637_v61 = vld [vmem:[#allocation3 + $0x10] sm:$0xff]  ;;  %v633_v62 = vmul.f32 0.001953125, %v629_v60  ;;  %v636_v1 = vld [vmem:[#allocation3 + $0x8] sm:$0xff]  ;;  %v632_v4 = vmul.f32 0.001953125, %v628_v0 }
 0x24e   : > { %v639_v59 = vmul.f32 0.001953125, %v635_v57  ;;  %v641_v63 = vmul.f32 0.001953125, %v637_v61  ;;  %v640_v5 = vmul.f32 0.001953125, %v636_v1  ;;  %v630_v6 = vld [vmem:[#allocation2 + $0x18] sm:$0xff]  ;;  %v651_v33 = vld [vmem:[%s1678_s2] sm:$0xff]  ;;  %v653_v34 = vld [vmem:[%s1678_s2 + $0x10] sm:$0xff] }
 0x24f   : > { %v643_v2 = vmul.f32 %v631_v58, %v631_v58  ;;  %v638_v8 = vld [vmem:[#allocation3 + $0x18] sm:$0xff]  ;;  %v645_v10 = vmul.f32 %v633_v62, %v633_v62  ;;  %v634_v12 = vmul.f32 0.001953125, %v630_v6  ;;  %v644_v15 = vmul.f32 %v632_v4, %v632_v4  ;;  %v652_v36 = vld [vmem:[%s1678_s2 + $0x8] sm:$0xff] }
 0x250   : > { %v642_v13 = vmul.f32 0.001953125, %v638_v8  ;;  %v654_v39 = vld [vmem:[%s1678_s2 + $0x18] sm:$0xff] }
 0x251   : > { %v647_v14 = vsub.f32 %v639_v59, %v643_v2  ;;  %v649_v11 = vsub.f32 %v641_v63, %v645_v10  ;;  %v646_v9 = vmul.f32 %v634_v12, %v634_v12  ;;  %v648_v16 = vsub.f32 %v640_v5, %v644_v15 }
 0x253   : > { %v655_v7 = vadd.f32 1e-05, %v647_v14  ;;  %v657_v29 = vadd.f32 1e-05, %v649_v11  ;;  %v650_v30 = vsub.f32 %v642_v13, %v646_v9  ;;  %v656_v31 = vadd.f32 1e-05, %v648_v16 }
 0x255   : > { %1092 = vrsqrt.f32 %v655_v7  ;;  %v658_v32 = vadd.f32 1e-05, %v650_v30 }
 0x256   : > { %1094 = vrsqrt.f32 %v657_v29 }
 0x257   : > { %1096 = vrsqrt.f32 %v656_v31 }
 0x258   : > { %1098 = vrsqrt.f32 %v658_v32 }
 0x262   : > { %v1093_v35 = vpop.eup %1092 }
 0x263   : > { %v1095_v37 = vpop.eup %1094  ;;  %v663_v38 = vmul.f32 %v1093_v35, %v651_v33 }
 0x264   : > { %v1097_v40 = vpop.eup %1096  ;;  %v665_v41 = vmul.f32 %v1095_v37, %v653_v34 }
 0x265   : > { %v1099_v42 = vpop.eup %1098  ;;  %v667_v43 = vmul.f32 %v663_v38, %v631_v58  ;;  %692 = vst.msk [vmem:[#allocation2] sm:$0xff] %vm691_vm15, %v663_v38  ;;  %v664_v3 = vmul.f32 %v1097_v40, %v652_v36 }
 0x266   : > { %v669_v44 = vmul.f32 %v665_v41, %v633_v62  ;;  %694 = vst.msk [vmem:[#allocation2 + $0x10] sm:$0xff] %vm691_vm15, %v665_v41  ;;  %v666_v45 = vmul.f32 %v1099_v42, %v654_v39 }
 0x267   : > { %675 = vrot.lane.b32.xlu0 %v667_v43, %s1255_s24  ;;  %v668_v46 = vmul.f32 %v664_v3, %v632_v4  ;;  %693 = vst.msk [vmem:[#allocation2 + $0x8] sm:$0xff] %vm691_vm15, %v664_v3 }
 0x268   : > { %679 = vrot.lane.b32.xlu1 %v669_v44, %s1255_s24  ;;  %v670_v47 = vmul.f32 %v666_v45, %v634_v12  ;;  %695 = vst.msk [vmem:[#allocation2 + $0x18] sm:$0xff] %vm691_vm15, %v666_v45 }
 0x26b   : > { %677 = vrot.lane.b32.xlu0 %v668_v46, %s1255_s24 }
 0x26c   : > { %681 = vrot.lane.b32.xlu1 %v670_v47, %s1255_s24 }
 0x2d9   : > { %v676_v48 = vpop.permute.xlu0 %675 }
 0x2da   : > { %v687_v49 = vsub.f32 %v651_v33, %v676_v48  ;;  %v680_v50 = vpop.permute.xlu1 %679 }
 0x2db   : > { %v689_v51 = vsub.f32 %v653_v34, %v680_v50 }
 0x2dc   : > { %700 = vrot.lane.b32.xlu0 %v687_v49, %s1256_s30 }
 0x2dd   : > { %v678_v52 = vpop.permute.xlu0 %677 }
 0x2de   : > { %v688_v53 = vsub.f32 %v652_v36, %v678_v52  ;;  %v682_v54 = vpop.permute.xlu1 %681 }
 0x2df   : > { %v690_v55 = vsub.f32 %v654_v39, %v682_v54 }
 0x2e0   : > { %704 = vrot.lane.b32.xlu0 %v689_v51, %s1256_s30  ;;  %702 = vrot.lane.b32.xlu1 %v688_v53, %s1256_s30 }
 0x2e4   : > { %706 = vrot.lane.b32.xlu1 %v690_v55, %s1256_s30 }
 0x34e   : > { %v701_v56 = vpop.permute.xlu0 %700 }
 0x34f   : > { %712 = vst.msk [vmem:[#allocation3] sm:$0xff] %vm691_vm15, %v701_v56 }
 0x352   : > { %v703_v57 = vpop.permute.xlu1 %702  ;;  %v705_v58 = vpop.permute.xlu0 %704 }
 0x353   : > { %713 = vst.msk [vmem:[#allocation3 + $0x8] sm:$0xff] %vm691_vm15, %v703_v57  ;;  %714 = vst.msk [vmem:[#allocation3 + $0x10] sm:$0xff] %vm691_vm15, %v705_v58 }
 0x356   : > { %v707_v59 = vpop.permute.xlu1 %706 }
 0x357   : > { %715 = vst.msk [vmem:[#allocation3 + $0x18] sm:$0xff] %vm691_vm15, %v707_v59 }
 0x358 PF: > { %p978_p5 = scmp.ne.s32.totalorder %s1230_s19, 1 }
 0x35a   : > { %718 = sbr.rel (%p978_p5) target bundleno = 1047 (0x417), region = 52 }
 0x35f   : > { %v721_v60 = vld [vmem:[#allocation2 + $0x10] sm:$0xff]  ;;  %v719_v61 = vld [vmem:[#allocation2] sm:$0xff]  ;;  %v1257_v62 = vmov 0   ;;  %v722_v63 = vld [vmem:[#allocation2 + $0x18] sm:$0xff]  ;;  %vm865_vm0 = vcmask 261120  }
 0x360   : > { %1101 = vset.pattern.permute.xlu1 %v1257_v62  ;;  %1100 = vset.pattern.permute.xlu0 %v1257_v62  ;;  %v720_v0 = vld [vmem:[#allocation2 + $0x8] sm:$0xff]  ;;  %v755_v2 = vld [vmem:[#allocation3] sm:$0xff]  ;;  %v758_v4 = vld [vmem:[#allocation3 + $0x18] sm:$0xff] }
 0x361   : > { %735 = vperm.xlu1 %1101, %v721_v60   ;;  %725 = vperm.xlu0 %1100, %v719_v61   ;;  %v756_v1 = vld [vmem:[#allocation3 + $0x8] sm:$0xff]  ;;  %v757_v5 = vld [vmem:[#allocation3 + $0x10] sm:$0xff] }
 0x365   : > { %740 = vperm.xlu1 %1101, %v722_v63   ;;  %730 = vperm.xlu0 %1100, %v720_v0  }
 0x369   : > { %766 = vperm.xlu1 %1101, %v756_v1   ;;  %761 = vperm.xlu0 %1100, %v755_v2  }
 0x36d   : > { %776 = vperm.xlu1 %1101, %v758_v4   ;;  %771 = vperm.xlu0 %1100, %v757_v5  }
 0x3dc   : > { %v736_v6 = vpop.permute.xlu1 %735  ;;  %v726_v8 = vpop.permute.xlu0 %725 }
 0x3dd   : > { %v743_v13 = vmul.f32 %v726_v8, %v1451_v20  ;;  %v749_v9 = vmul.f32 %v736_v6, %v1465_v25  ;;  %v750_v7 = vmul.f32 %v736_v6, %v1467_v26  ;;  %v744_v16 = vmul.f32 %v726_v8, %v1455_v22 }
 0x3de   : > { %v745_v29 = vmul.f32 %v726_v8, %v1453_v21 }
 0x3e0   : > { %v741_v10 = vpop.permute.xlu1 %740  ;;  %v731_v12 = vpop.permute.xlu0 %730 }
 0x3e1   : > { %v746_v14 = vmul.f32 %v731_v12, %v1459_v18  ;;  %v747_v15 = vmul.f32 %v731_v12, %v1463_v24  ;;  %v748_v11 = vmul.f32 %v731_v12, %v1461_v23  ;;  %v751_v23 = vmul.f32 %v1449_v19, %v736_v6 }
 0x3e2   : > { %v752_v24 = vmul.f32 %v741_v10, %v1469_v27  ;;  %v753_v36 = vmul.f32 %v741_v10, %v1471_v28  ;;  %v754_v37 = vmul.f32 %v1457_v17, %v741_v10 }
 0x3e4   : > { %v767_v30 = vpop.permute.xlu1 %766  ;;  %v762_v31 = vpop.permute.xlu0 %761 }
 0x3e5   : > { %v1545_v32 = vadd.f32 %v767_v30, %v746_v14  ;;  %v1547_v33 = vadd.f32 %v767_v30, %v747_v15  ;;  %v1549_v20 = vadd.f32 %v767_v30, %v748_v11  ;;  %v1551_v18 = vadd.f32 %v762_v31, %v743_v13 }
 0x3e6   : > { %v1555_v25 = vadd.f32 %v762_v31, %v744_v16  ;;  %v1557_v26 = vadd.f32 %v762_v31, %v745_v29 }
 0x3e7   : > { %v794_v21 = vsub.f32 0.0, %v1545_v32  ;;  %v795_v22 = vsub.f32 0.0, %v1547_v33  ;;  %v796_v34 = vsub.f32 0.0, %v1549_v20  ;;  %v791_v35 = vsub.f32 0.0, %v1551_v18 }
 0x3e8   : > { %v792_v19 = vsub.f32 0.0, %v1555_v25  ;;  %v793_v27 = vsub.f32 0.0, %v1557_v26  ;;  %v777_v38 = vpop.permute.xlu1 %776  ;;  %v772_v39 = vpop.permute.xlu0 %771 }
 0x3e9   : > { %v809_v40 = vmul.f32 1.442695, %v794_v21  ;;  %v811_v41 = vmul.f32 1.442695, %v795_v22  ;;  %v813_v42 = vmul.f32 1.442695, %v796_v34  ;;  %v1567_v43 = vadd.f32 %v777_v38, %v752_v24 }
 0x3ea   : > { %v803_v3 = vmul.f32 1.442695, %v791_v35  ;;  %v805_v44 = vmul.f32 1.442695, %v792_v19  ;;  %v807_v45 = vmul.f32 1.442695, %v793_v27  ;;  %v1569_v46 = vadd.f32 %v777_v38, %v753_v36 }
 0x3eb   : > { %1102 = vpow2.f32 %v809_v40  ;;  %v1571_v28 = vadd.f32 %v777_v38, %v754_v37  ;;  %v800_v17 = vsub.f32 0.0, %v1567_v43  ;;  %v1574_v47 = vadd.f32 %v772_v39, %v749_v9 }
 0x3ec   : > { %1104 = vpow2.f32 %v811_v41  ;;  %v801_v48 = vsub.f32 0.0, %v1569_v46  ;;  %v1577_v49 = vadd.f32 %v772_v39, %v750_v7  ;;  %v1579_v50 = vadd.f32 %v772_v39, %v751_v23 }
 0x3ed   : > { %1106 = vpow2.f32 %v813_v42  ;;  %v802_v51 = vsub.f32 0.0, %v1571_v28  ;;  %v821_v52 = vmul.f32 1.442695, %v800_v17  ;;  %v797_v53 = vsub.f32 0.0, %v1574_v47 }
 0x3ee   : > { %1108 = vpow2.f32 %v803_v3  ;;  %v823_v54 = vmul.f32 1.442695, %v801_v48  ;;  %v798_v55 = vsub.f32 0.0, %v1577_v49  ;;  %v799_v56 = vsub.f32 0.0, %v1579_v50 }
 0x3ef   : > { %1110 = vpow2.f32 %v805_v44  ;;  %v825_v57 = vmul.f32 1.442695, %v802_v51  ;;  %v815_v58 = vmul.f32 1.442695, %v797_v53 }
 0x3f0   : > { %1112 = vpow2.f32 %v807_v45  ;;  %v817_v59 = vmul.f32 1.442695, %v798_v55  ;;  %v819_v60 = vmul.f32 1.442695, %v799_v56 }
 0x3f1   : > { %1114 = vpow2.f32 %v821_v52 }
 0x3f2   : > { %1116 = vpow2.f32 %v823_v54 }
 0x3f3   : > { %1118 = vpow2.f32 %v825_v57 }
 0x3f4   : > { %1120 = vpow2.f32 %v815_v58 }
 0x3f5   : > { %1122 = vpow2.f32 %v817_v59 }
 0x3f6   : > { %1124 = vpow2.f32 %v819_v60 }
 0x3f8   : > { %v1103_v61 = vpop.eup %1102 }
 0x3f9   : > { %v1105_v62 = vpop.eup %1104  ;;  %v830_v63 = vadd.f32 1.0, %v1103_v61 }
 0x3fa   : > { %v1107_v0 = vpop.eup %1106  ;;  %v831_v1 = vadd.f32 1.0, %v1105_v62 }
 0x3fb   : > { %v1109_v2 = vpop.eup %1108  ;;  %v832_v4 = vadd.f32 1.0, %v1107_v0  ;;  %1126 = vrcp.f32 %v830_v63 }
 0x3fc   : > { %v1111_v5 = vpop.eup %1110  ;;  %1128 = vrcp.f32 %v831_v1  ;;  %v827_v6 = vadd.f32 1.0, %v1109_v2 }
 0x3fd   : > { %v1113_v8 = vpop.eup %1112  ;;  %1130 = vrcp.f32 %v832_v4  ;;  %v828_v10 = vadd.f32 1.0, %v1111_v5 }
 0x3fe   : > { %v1115_v12 = vpop.eup %1114  ;;  %v829_v13 = vadd.f32 1.0, %v1113_v8  ;;  %1132 = vrcp.f32 %v827_v6 }
 0x3ff   : > { %v1117_v14 = vpop.eup %1116  ;;  %1134 = vrcp.f32 %v828_v10  ;;  %v836_v15 = vadd.f32 1.0, %v1115_v12 }
 0x400   : > { %v1119_v11 = vpop.eup %1118  ;;  %1136 = vrcp.f32 %v829_v13  ;;  %v837_v9 = vadd.f32 1.0, %v1117_v14 }
 0x401   : > { %v1121_v7 = vpop.eup %1120  ;;  %v838_v16 = vadd.f32 1.0, %v1119_v11  ;;  %1138 = vrcp.f32 %v836_v15 }
 0x402   : > { %v1123_v29 = vpop.eup %1122  ;;  %1140 = vrcp.f32 %v837_v9  ;;  %v833_v30 = vadd.f32 1.0, %v1121_v7 }
 0x403   : > { %v1125_v31 = vpop.eup %1124  ;;  %1142 = vrcp.f32 %v838_v16  ;;  %v834_v23 = vadd.f32 1.0, %v1123_v29 }
 0x404   : > { %v835_v24 = vadd.f32 1.0, %v1125_v31  ;;  %1144 = vrcp.f32 %v833_v30 }
 0x405   : > { %1146 = vrcp.f32 %v834_v23 }
 0x406   : > { %1148 = vrcp.f32 %v835_v24 }
 0x408   : > { %v1127_v21 = vpop.eup %1126 }
 0x409   : > { %v1129_v22 = vpop.eup %1128  ;;  %v854_v34 = vmul.f32 %v1127_v21, %v1545_v32 }
 0x40a   : > { %v1131_v35 = vpop.eup %1130  ;;  %v855_v36 = vmul.f32 %v1129_v22, %v1547_v33 }
 0x40b   : > { %v1133_v37 = vpop.eup %1132  ;;  %v856_v19 = vmul.f32 %v1131_v35, %v1549_v20  ;;  %867 = vst [vmem:[%s1474_s27 + $0x18] sm:$0xff] %v854_v34 }
 0x40c   : > { %v1135_v27 = vpop.eup %1134  ;;  %868 = vst [vmem:[%s1474_s27 + $0x20] sm:$0xff] %v855_v36  ;;  %v851_v38 = vmul.f32 %v1133_v37, %v1551_v18 }
 0x40d   : > { %v1137_v39 = vpop.eup %1136  ;;  %869 = vst.msk [vmem:[%s1474_s27 + $0x28] sm:$0xff] %vm865_vm0, %v856_v19  ;;  %v852_v32 = vmul.f32 %v1135_v27, %v1555_v25 }
 0x40e   : > { %v1139_v40 = vpop.eup %1138  ;;  %v853_v33 = vmul.f32 %v1137_v39, %v1557_v26  ;;  %863 = vst [vmem:[%s1474_s27] sm:$0xff] %v851_v38 }
 0x40f   : > { %v1141_v41 = vpop.eup %1140  ;;  %864 = vst [vmem:[%s1474_s27 + $0x8] sm:$0xff] %v852_v32  ;;  %v860_v20 = vmul.f32 %v1139_v40, %v1567_v43 }
 0x410   : > { %v1143_v42 = vpop.eup %1142  ;;  %866 = vst.msk [vmem:[%s1474_s27 + $0x10] sm:$0xff] %vm865_vm0, %v853_v33  ;;  %v861_v18 = vmul.f32 %v1141_v41, %v1569_v46 }
 0x411   : > { %v1145_v3 = vpop.eup %1144  ;;  %v862_v25 = vmul.f32 %v1143_v42, %v1571_v28  ;;  %873 = vst [vmem:[%s1474_s27 + $0x48] sm:$0xff] %v860_v20 }
 0x412   : > { %v1147_v44 = vpop.eup %1146  ;;  %874 = vst [vmem:[%s1474_s27 + $0x50] sm:$0xff] %v861_v18  ;;  %v857_v26 = vmul.f32 %v1145_v3, %v1574_v47 }
 0x413   : > { %v1149_v45 = vpop.eup %1148  ;;  %875 = vst.msk [vmem:[%s1474_s27 + $0x58] sm:$0xff] %vm865_vm0, %v862_v25  ;;  %v858_v17 = vmul.f32 %v1147_v44, %v1577_v49 }
 0x414   : > { %v859_v43 = vmul.f32 %v1149_v45, %v1579_v50  ;;  %870 = vst [vmem:[%s1474_s27 + $0x30] sm:$0xff] %v857_v26 }
 0x415   : > { %871 = vst [vmem:[%s1474_s27 + $0x38] sm:$0xff] %v858_v17 }
 0x416   : > { %872 = vst.msk [vmem:[%s1474_s27 + $0x40] sm:$0xff] %vm865_vm0, %v859_v43 }
 0x417 PF: > { %s884_s14 = smul.u32 %s1226_s18, %s1230_s19  ;;  %s891_s5 = sshll.u32 %s1474_s27, 4  ;;  %s1616_s5 = int_to_ptr.vmem [resolvable:$true] %s891_s5 }
 0x418   : > { %s1625_s11 = scalar_lea.sflag [#allocation5], %s202_s13  ;;  %s1150_s12 = scalar_lea.vmem %s1616_s5, 1536 }
 0x419   : > { %s1000_s6 = smul.u32 1536, %s884_s14  ;;  %p1151_p7 = scmp.ne.s32.totalorder %s1616_s5, %s1150_s12 }
 0x41a   : > { %s1258_s18 = smov [#allocation4]  }
 0x41b   : > { %s1621_s10 = scalar_lea.hbm %s1680_s4, %s1000_s6  ;;  %p1152_p9 = pnand %p1151_p7, %p1339_p6 }
 0x41c   : > { %s1154_s19 = sshll.u32 %s1258_s18, 4  ;;  %s1155_s19 = int_to_ptr.vmem [resolvable:$false] %s1154_s19 }
 0x41d   : > { %p1153_p10 = pneg %p1152_p9  ;;  %s1156_s27 = scalar_lea.vmem %s1155_s19, 3072 }
 0x41e   : > { %p1157_p11 = scmp.lt.s32.totalorder %s1616_s5, %s1155_s19  ;;  %p1158_p12 = scmp.lt.s32.totalorder %s1156_s27, %s1150_s12 }
 0x420   : > { %p1159_p13 = por %p1158_p12, %p1157_p11 }
 0x422   : > { %p1160_p0 = pnand %p1159_p13, %p1153_p10 }
 0x424   : > { %1163 = shalt.err (!%p1160_p0)
}
 0x425   : > { %s1164_s13 = scalar_lea.hbm %s1621_s10, 1536  ;;  %s1168_s30 = scalar_lea.hbm %s1680_s4, 3072 }
 0x426   : > { %p1165_p1 = scmp.ne.s32.totalorder %s1621_s10, %s1164_s13  ;;  %p1169_p4 = scmp.lt.s32.totalorder %s1621_s10, %s1680_s4 }
 0x427   : > { %p1170_p5 = scmp.lt.s32.totalorder %s1168_s30, %s1164_s13 }
 0x428   : > { %p1166_p2 = pnand %p1165_p1, %p1339_p6 }
 0x429   : > { %p1171_p7 = por %p1170_p5, %p1169_p4 }
 0x42a   : > { %p1167_p3 = pneg %p1166_p2 }
 0x42c   : > { %p1172_p9 = pnand %p1171_p7, %p1167_p3 }
 0x42e   : > { %1175 = shalt.err (!%p1172_p9)
}
 0x42f   : > { %s1259_s8 = smov 384   ;;  %s1260_s9 = smov 24  }
 0x430   : > { %1001 = dma.vmem_to_hbm [thread:$0]  (%p1339_p6), %s1616_s5, 1536, %s1621_s10, %s1625_s11, %s1259_s8, %s1259_s8, %s1260_s9  }
 0x431 PF: > { %p1007_p10 = scmp.ge.s32.totalorder %s1242_s22, 2  ;;  %s906_s12 = sand.u32 1, %s1214_s15  }
 0x432   : > { %s907_s18 = scalar_lea.sflag [#allocation5], %s906_s12 }
 0x433   : > { %p1004_p11 = pnand %p1007_p10, %p1346_p8 }
 0x435   : > { %p1005_p12 = pneg %p1004_p11 }
 0x437   : > { %1209 = dma.done.wait (%p1005_p12), %s907_s18, 1536  }
 0x438   : > { %1211 = vsyncadd (%p1005_p12), %s907_s18, 4294965760  ;;  %s17_s22 = sadd.s32 1, %s1242_s22   ;;  %s1684_s15 = smov %s1218_s16 }
 0x439   : > { %p14_p13 = scmp.ge.s32.totalorder %s17_s22, 6   ;;  %s1685_s16 = smov %s1222_s17 }
 0x43a   : > { %s1686_s17 = smov %s1355_s7  ;;  %s1687_s18 = smov %s1234_s20 }
 0x43b   : > { %s1688_s19 = smov %s1238_s21  ;;  %s1689_s20 = smov %s1692_s25 }
 0x43c   : > { %s1690_s21 = smov %s1696_s26  ;;  %16 = sbr.rel (!%p14_p13) target bundleno = 5 (0x5), region = 87 }
 0x441   :  { %912 = vsyncpa [#allocation5], 1 }
 0x442   :  { %914 = vsyncpa [#allocation5 + $0x1], 1 }

</bundles_post_ra>
